<compile_context>
chip_gen: v5e
topology: v5e:2x2
jax: 0.10.0
libtpu: 0.0.40
codegen_flags: <defaults>
</compile_context>

<pallas_src>
import functools
import numpy as np
import jax
import jax.numpy as jnp
from jax.experimental import pallas as pl
from jax.experimental.pallas import tpu as pltpu

NEG_SLOPE = 0.01                       # nn.LeakyReLU default negative_slope
_CDT = jnp.bfloat16                    # MXU/activation dtype (accumulation stays f32)


# ---------------------------------------------------------------------------
# per-generation VMEM budget
# ---------------------------------------------------------------------------
def _get_vmem_budget():
    cap = 64 * 1024 * 1024             # conservative fallback (safe on v7x)
    try:
        info = pltpu.get_tpu_info()
        c = int(getattr(info, "vmem_capacity_bytes", 0) or 0)
        if c >= 16 * 1024 * 1024:
            cap = c
    except Exception:
        pass
    return int(min(cap * 3 // 4, 100 * 1024 * 1024))


_VMEM_BUDGET = _get_vmem_budget()


# ---------------------------------------------------------------------------
# small helpers
# ---------------------------------------------------------------------------
def _largest_divisor(n, cap):
    cap = max(1, min(n, int(cap)))
    for t in range(cap, 0, -1):
        if n % t == 0:
            return t
    return 1


def _pick_tile(m, cap):
    """Largest divisor of m <= cap that is a multiple of 8 (or == m)."""
    cap = int(max(1, min(m, cap)))
    for t in range(cap, 0, -1):
        if m % t == 0 and (t % 8 == 0 or t == m):
            return t
    return m


def _mm_tile(M, K, N, out_bytes=2):
    """Row tile for (M,K)x(K,N) matmul kernels, derived from the VMEM budget."""
    fixed = 2 * K * N * 2 + 4 * N * 4
    per_row = 2 * (K * 2 + N * out_bytes) + N * 4     # x/out blocks (x2 bufs) + f32 temps
    avail = max(int(_VMEM_BUDGET * 0.6) - fixed, per_row * 8)
    cap = max(8, avail // per_row)
    if M >= 1024:
        cap = min(cap, M // 2)        # >=2 grid steps so both v7x TensorCores get work
    return _pick_tile(M, cap)


# ---------------------------------------------------------------------------
# Pallas kernels
# ---------------------------------------------------------------------------
def _mm_kernel(x_ref, w_ref, s_ref, sh_ref, o_ref, *, neg_slope):
    y = jnp.dot(x_ref[...], w_ref[...], preferred_element_type=jnp.float32)
    y = y * s_ref[...] + sh_ref[...]            # conv bias already folded into sh
    if neg_slope is not None:
        y = jnp.where(y >= 0, y, y * neg_slope)
    o_ref[...] = y.astype(o_ref.dtype)


def matmul_affine_act(x, w, b=None, scale=None, shift=None, neg_slope=None,
                      out_dtype=_CDT):
    """out = act(scale*(x @ w + b) + shift);  x:(M,K), w:(K,N), rest:(N,)."""
    M, K = x.shape
    N = w.shape[1]
    b = jnp.zeros((N,), jnp.float32) if b is None else b
    scale = jnp.ones((N,), jnp.float32) if scale is None else scale
    shift = jnp.zeros((N,), jnp.float32) if shift is None else shift
    shift = b * scale + shift                   # fold conv bias into the affine
    tm = _mm_tile(M, K, N, jnp.dtype(out_dtype).itemsize)
    kernel = functools.partial(_mm_kernel, neg_slope=neg_slope)
    return pl.pallas_call(
        kernel,
        out_shape=jax.ShapeDtypeStruct((M, N), out_dtype),
        grid=(M // tm,),
        in_specs=[
            pl.BlockSpec((tm, K), lambda i: (i, 0)),
            pl.BlockSpec((K, N), lambda i: (0, 0)),
            pl.BlockSpec((1, N), lambda i: (0, 0)),
            pl.BlockSpec((1, N), lambda i: (0, 0)),
        ],
        out_specs=pl.BlockSpec((tm, N), lambda i: (i, 0)),
        compiler_params=pltpu.CompilerParams(
            dimension_semantics=("parallel",), vmem_limit_bytes=_VMEM_BUDGET),
    )(x.astype(_CDT), w.astype(_CDT),
      scale.reshape(1, N), shift.reshape(1, N))


def _mm_rowshift_kernel(x_ref, w_ref, e_ref, o_ref, *, neg_slope):
    y = jnp.dot(x_ref[0], w_ref[...], preferred_element_type=jnp.float32)
    y = y + e_ref[...]                          # per-batch shift (bias folded in)
    if neg_slope is not None:
        y = jnp.where(y >= 0, y, y * neg_slope)
    o_ref[0] = y.astype(o_ref.dtype)


def matmul_rowshift(x, w, b, e, neg_slope=None, out_dtype=_CDT):
    """out[b] = act(x[b] @ w + bias + e[b]);  x:(B,M,K), w:(K,N), e:(B,N)."""
    B, M, K = x.shape
    N = w.shape[1]
    e = e + b.reshape(1, N)                     # fold conv bias into per-batch shift
    tm = _mm_tile(M, K, N, jnp.dtype(out_dtype).itemsize)
    kernel = functools.partial(_mm_rowshift_kernel, neg_slope=neg_slope)
    return pl.pallas_call(
        kernel,
        out_shape=jax.ShapeDtypeStruct((B, M, N), out_dtype),
        grid=(B, M // tm),
        in_specs=[
            pl.BlockSpec((1, tm, K), lambda bb, i: (bb, i, 0)),
            pl.BlockSpec((K, N), lambda bb, i: (0, 0)),
            pl.BlockSpec((1, N), lambda bb, i: (bb, 0)),
        ],
        out_specs=pl.BlockSpec((1, tm, N), lambda bb, i: (bb, i, 0)),
        compiler_params=pltpu.CompilerParams(
            dimension_semantics=("parallel", "parallel"),
            vmem_limit_bytes=_VMEM_BUDGET),
    )(x.astype(_CDT), w.astype(_CDT), e)


def _bapply_kernel(p_ref, x_ref, o_ref):
    o_ref[0] = jnp.dot(p_ref[...], x_ref[0],
                       preferred_element_type=jnp.float32).astype(o_ref.dtype)


def apply_operator_batched(P, x, out_dtype=_CDT):
    """out[b] = P @ x[b];  P:(Mout,Min), x:(B,Min,C).  Used for bilinear 2x upsample."""
    Mout, Min = P.shape
    B, _, C = x.shape
    tm = _mm_tile(Mout, Min, C, jnp.dtype(out_dtype).itemsize)
    return pl.pallas_call(
        _bapply_kernel,
        out_shape=jax.ShapeDtypeStruct((B, Mout, C), out_dtype),
        grid=(B, Mout // tm),
        in_specs=[
            pl.BlockSpec((tm, Min), lambda bb, i: (i, 0)),
            pl.BlockSpec((1, Min, C), lambda bb, i: (bb, 0, 0)),
        ],
        out_specs=pl.BlockSpec((1, tm, C), lambda bb, i: (bb, i, 0)),
        compiler_params=pltpu.CompilerParams(
            dimension_semantics=("parallel", "parallel"),
            vmem_limit_bytes=_VMEM_BUDGET),
    )(P.astype(_CDT), x.astype(_CDT))


def _resize2d_kernel(ay_ref, axt_ref, x_ref, o_ref):
    # out = Ay @ X @ AxT  (separable bilinear resize for a single-channel map)
    t = jnp.dot(x_ref[0], axt_ref[...], preferred_element_type=jnp.float32)
    o_ref[0] = jnp.dot(ay_ref[...], t,
                       preferred_element_type=jnp.float32).astype(o_ref.dtype)


def bilinear_resize_1ch(x, hout, wout, align_corners):
    """Separable bilinear resize of a 1-channel map.  x:(B,H,W,1) -> (B,hout,wout,1)."""
    B, H, W, _ = x.shape
    Ay = jnp.asarray(bilinear_matrix(hout, H, align_corners))
    AxT = jnp.asarray(bilinear_matrix(wout, W, align_corners).T)
    out = pl.pallas_call(
        _resize2d_kernel,
        out_shape=jax.ShapeDtypeStruct((B, hout, wout), jnp.float32),
        grid=(B,),
        in_specs=[
            pl.BlockSpec((hout, H), lambda bb: (0, 0)),
            pl.BlockSpec((W, wout), lambda bb: (0, 0)),
            pl.BlockSpec((1, H, W), lambda bb: (bb, 0, 0)),
        ],
        out_specs=pl.BlockSpec((1, hout, wout), lambda bb: (bb, 0, 0)),
        compiler_params=pltpu.CompilerParams(
            dimension_semantics=("parallel",), vmem_limit_bytes=_VMEM_BUDGET),
    )(Ay, AxT, x.reshape(B, H, W))
    return out.reshape(B, hout, wout, 1)


def _conv3x3_kernel(*refs, rows, W, neg_slope, fuse_taps, has_post):
    if has_post:
        xp_ref, w_ref, s_ref, sh_ref, pw_ref, pb_ref, o_ref, acc_ref = refs
    else:
        xp_ref, w_ref, s_ref, sh_ref, o_ref, acc_ref = refs
    k = pl.program_id(2)

    @pl.when(k == 0)
    def _():
        acc_ref[...] = jnp.zeros_like(acc_ref)

    ck = xp_ref.shape[-1]
    cout = w_ref.shape[-1]
    row0 = pl.program_id(1) * rows

    if fuse_taps:
        # im2col: concat the 9 shifted patches (lane-aligned ck only) into one matmul
        patches = []
        for ky in range(3):
            xrows = xp_ref[0, pl.ds(row0 + ky, rows), :, :]       # (rows, W+2, ck)
            for kx in range(3):
                patches.append(xrows[:, kx:kx + W, :].reshape(rows * W, ck))
        patch = jnp.concatenate(patches, axis=-1)                 # (rows*W, 9*ck)
        acc_ref[...] += jnp.dot(patch, w_ref[...].reshape(9 * ck, cout),
                                preferred_element_type=jnp.float32)
    else:
        for ky in range(3):
            xrows = xp_ref[0, pl.ds(row0 + ky, rows), :, :]       # (rows, W+2, ck)
            for kx in range(3):
                p = xrows[:, kx:kx + W, :].reshape(rows * W, ck)
                acc_ref[...] += jnp.dot(p, w_ref[ky * 3 + kx],
                                        preferred_element_type=jnp.float32)

    @pl.when(k == pl.num_programs(2) - 1)
    def _():
        y = acc_ref[...] * s_ref[...] + sh_ref[...]               # bias folded into sh
        if neg_slope is not None:
            y = jnp.where(y >= 0, y, y * neg_slope)
        if has_post:
            # fused trailing 1x1 (16 -> 1): VPU multiply + lane reduce (no N=1 matmul)
            y = jnp.sum(y * pw_ref[...], axis=-1, keepdims=True) + pb_ref[...]
        o_ref[...] = y.reshape(o_ref.shape).astype(o_ref.dtype)


def conv3x3(x, w, b, scale=None, shift=None, neg_slope=None,
            post_w=None, post_b=None, out_dtype=_CDT):
    """3x3 conv, stride 1, pad 1 (+BN affine +LeakyReLU [+fused trailing 1x1 to 1ch]).
    x:(B,H,W,Cin), w:(9,Cin,Cout), post_w:(Cout,1)."""
    B, H, W, Cin = x.shape
    Cout = w.shape[-1]
    has_post = post_w is not None
    C2 = post_w.shape[-1] if has_post else Cout
    if has_post:
        assert C2 == 1, "fused trailing 1x1 is specialised to a single output channel"
    scale = jnp.ones((Cout,), jnp.float32) if scale is None else scale
    shift = jnp.zeros((Cout,), jnp.float32) if shift is None else shift
    shift = b * scale + shift                       # fold conv bias into the BN affine
    xp = jnp.pad(x.astype(_CDT), ((0, 0), (1, 1), (1, 1), (0, 0)))

    # budget-aware tiling: prefer rows = H so the padded input / weight slabs are
    # never re-fetched across the row axis when the K axis is tiled (no DMA amp.)
    budget = int(_VMEM_BUDGET * 0.8)
    outc = C2 if has_post else Cout

    def est(tk_, rows_):
        return (2 * (H + 2) * (W + 2) * tk_ * 2     # padded input block (x2 buffers)
                + 2 * 9 * tk_ * Cout * 2            # weight block (x2 buffers)
                + 2 * rows_ * W * Cout * 4          # f32 accumulator + epilogue temps
                + 2 * rows_ * W * outc * 4)         # output block

    kt_cands = [Cin] + [t for t in range(128 * (Cin // 128), 0, -128)
                        if t < Cin and Cin % t == 0]
    row_divs = [d for d in range(H, 0, -1) if H % d == 0]
    tk = rows = None
    for r in row_divs:
        for t in kt_cands:
            if est(t, r) <= budget:
                tk, rows = t, r
                break
        if tk is not None:
            break
    if tk is None:                                   # last resort
        tk, rows = kt_cands[-1], row_divs[-1]
    K = Cin // tk
    # give the (parallel) row axis >=2 steps when it costs nothing (v7x: 2 TCs)
    if B == 1 and K == 1 and rows == H and H % 2 == 0 and H * W >= 512:
        rows = H // 2
    R = H // rows
    fuse = (rows * W <= 256) and (tk % 128 == 0) and (tk <= 1024)

    kernel = functools.partial(_conv3x3_kernel, rows=rows, W=W,
                               neg_slope=neg_slope, fuse_taps=fuse,
                               has_post=has_post)
    in_specs = [
        pl.BlockSpec((1, H + 2, W + 2, tk), lambda bb, r, k: (bb, 0, 0, k)),
        pl.BlockSpec((9, tk, Cout), lambda bb, r, k: (0, k, 0)),
        pl.BlockSpec((1, Cout), lambda bb, r, k: (0, 0)),
        pl.BlockSpec((1, Cout), lambda bb, r, k: (0, 0)),
    ]
    args = [xp, w.astype(_CDT), scale.reshape(1, Cout), shift.reshape(1, Cout)]
    if has_post:
        in_specs += [pl.BlockSpec((1, Cout), lambda bb, r, k: (0, 0)),
                     pl.BlockSpec((1, 1), lambda bb, r, k: (0, 0))]
        args += [post_w.reshape(1, Cout).astype(jnp.float32),
                 post_b.reshape(1, 1).astype(jnp.float32)]
    # TODO(synk): a fully lane-dense flattened (B, H*W) store for the C2=1 output
    # would remove the masked vst; kept NHWC layout for lowering safety.

    return pl.pallas_call(
        kernel,
        out_shape=jax.ShapeDtypeStruct((B, H, W, C2), out_dtype),
        grid=(B, R, K),
        in_specs=in_specs,
        out_specs=pl.BlockSpec((1, rows, W, C2), lambda bb, r, k: (bb, r, 0, 0)),
        scratch_shapes=[pltpu.VMEM((rows * W, Cout), jnp.float32)],
        compiler_params=pltpu.CompilerParams(
            dimension_semantics=("parallel", "parallel", "arbitrary"),
            vmem_limit_bytes=_VMEM_BUDGET),
    )(*args)


def _ppm_kernel(x_ref, m_ref, p_ref, w_ref, s_ref, sh_ref, o_ref):
    # 1x1 conv + BN + LeakyReLU on conv5, then masked average pool via operator P.
    f = jnp.dot(x_ref[0], w_ref[0], preferred_element_type=jnp.float32)   # (HW, 256)
    f = f * s_ref[...] + sh_ref[...]
    f = jnp.where(f >= 0, f, f * NEG_SLOPE)
    m = m_ref[0]                                                          # (HW, 1) f32
    num = jnp.dot(p_ref[0], (f * m).astype(p_ref.dtype),
                  preferred_element_type=jnp.float32)
    den = jnp.dot(p_ref[0], m.astype(p_ref.dtype),
                  preferred_element_type=jnp.float32)
    o_ref[0] = (num / (den + 1e-6)).astype(o_ref.dtype)


def ppm_tripool(conv5, mask, Ps, ws, bs, ss, shs):
    """All 4 tripool scales fused into a single pallas_call.
    conv5:(B,H,W,2048), mask:(B,H,W,1), Ps:(S,HW,HW), ws:(S,2048,256), rest:(S,256).
    Output is written directly in the concat-ready layout (B,H,W,S*256)."""
    B, H, W, C = conv5.shape
    S = Ps.shape[0]
    HW = H * W
    N = ws.shape[-1]
    shs = bs * ss + shs                          # fold conv bias into the BN affine
    out = pl.pallas_call(
        _ppm_kernel,
        out_shape=jax.ShapeDtypeStruct((B, HW, S * N), _CDT),
        grid=(B, S),   # conv5 block index constant across S -> DMA'd once per batch
        in_specs=[
            pl.BlockSpec((1, HW, C), lambda bb, s: (bb, 0, 0)),
            pl.BlockSpec((1, HW, 1), lambda bb, s: (bb, 0, 0)),
            pl.BlockSpec((1, HW, HW), lambda bb, s: (s, 0, 0)),
            pl.BlockSpec((1, C, N), lambda bb, s: (s, 0, 0)),
            pl.BlockSpec((1, N), lambda bb, s: (s, 0)),
            pl.BlockSpec((1, N), lambda bb, s: (s, 0)),
        ],
        out_specs=pl.BlockSpec((1, HW, N), lambda bb, s: (bb, 0, s)),
        compiler_params=pltpu.CompilerParams(
            dimension_semantics=("parallel", "parallel"),
            vmem_limit_bytes=_VMEM_BUDGET),
    )(conv5.reshape(B, HW, C).astype(_CDT), mask.reshape(B, HW, 1),
      Ps.astype(_CDT), ws.astype(_CDT), ss, shs)
    return out.reshape(B, H, W, S * N)


def _involution_kernel(xp_ref, wm_ref, e_ref, o_ref, *, rows, W, groups):
    C = xp_ref.shape[-1]
    row0 = pl.program_id(1) * rows
    acc = jnp.zeros((rows, W, C), jnp.float32)
    for ky in range(3):
        xrows = xp_ref[0, pl.ds(row0 + ky, rows), :, :]            # (rows, W+2, C) bf16
        for kx in range(3):
            t = ky * 3 + kx
            xs = xrows[:, kx:kx + W, :]                            # (rows, W, C)
            wt = wm_ref[0, :, :, t * groups:(t + 1) * groups]      # (rows, W, G)
            # group -> channel broadcast via tiny 0/1 expansion matmul
            wf = jnp.dot(wt.reshape(rows * W, groups), e_ref[...],
                         preferred_element_type=jnp.float32).reshape(rows, W, C)
            acc = acc + wf * xs.astype(jnp.float32)
    o_ref[0] = acc.astype(o_ref.dtype)


def involution3x3(x, wmap, E, groups):
    """Per-pixel grouped 3x3 MAC.  x:(B,H,W,C), wmap:(B,H,W,9*groups) with channel
    ordering t*groups+g, E:(groups,C) 0/1 group->channel expansion (stays compact)."""
    B, H, W, C = x.shape
    xp = jnp.pad(x.astype(_CDT), ((0, 0), (1, 1), (1, 1), (0, 0)))
    rows = _largest_divisor(H, max(1, 16384 // (W * C)))   # keep live tile small
    kernel = functools.partial(_involution_kernel, rows=rows, W=W, groups=groups)
    return pl.pallas_call(
        kernel,
        out_shape=jax.ShapeDtypeStruct((B, H, W, C), _CDT),
        grid=(B, H // rows),
        in_specs=[
            pl.BlockSpec((1, H + 2, W + 2, C), lambda bb, r: (bb, 0, 0, 0)),
            pl.BlockSpec((1, rows, W, 9 * groups), lambda bb, r: (bb, r, 0, 0)),
            pl.BlockSpec((groups, C), lambda bb, r: (0, 0)),
        ],
        out_specs=pl.BlockSpec((1, rows, W, C), lambda bb, r: (bb, r, 0, 0)),
        compiler_params=pltpu.CompilerParams(
            dimension_semantics=("parallel", "parallel"),
            vmem_limit_bytes=_VMEM_BUDGET),
    )(xp, wmap.astype(_CDT), E.astype(_CDT))


def _gap_kernel(x_ref, o_ref):
    c = x_ref.shape[-1]
    v = x_ref[0].astype(jnp.float32).reshape(-1, c)
    o_ref[0] = jnp.mean(v, axis=0, keepdims=True)


def global_avg_pool(x):
    # TODO(synk): could be fused into the finalize branch of the preceding conv3x3.
    B, H, W, C = x.shape
    out = pl.pallas_call(
        _gap_kernel,
        out_shape=jax.ShapeDtypeStruct((B, 1, C), jnp.float32),
        grid=(B,),
        in_specs=[pl.BlockSpec((1, H, W, C), lambda bb: (bb, 0, 0, 0))],
        out_specs=pl.BlockSpec((1, 1, C), lambda bb: (bb, 0, 0)),
        compiler_params=pltpu.CompilerParams(
            dimension_semantics=("parallel",), vmem_limit_bytes=_VMEM_BUDGET),
    )(x)
    return out.reshape(B, C)


# ---------------------------------------------------------------------------
# Glue: operator construction, pixel shuffle, resize
# ---------------------------------------------------------------------------
def bilinear_matrix(n_out, n_in, align_corners):
    A = np.zeros((n_out, n_in), np.float32)
    for o in range(n_out):
        if align_corners:
            src = 0.0 if n_out == 1 else o * (n_in - 1) / (n_out - 1)
        else:
            src = max((o + 0.5) * (n_in / n_out) - 0.5, 0.0)
        src = min(src, n_in - 1)
        i0 = int(np.floor(src))
        i1 = min(i0 + 1, n_in - 1)
        f = src - i0
        A[o, i0] += 1.0 - f
        A[o, i1] += f
    return A


def avgpool_matrix(H, W, pool_size):
    """AvgPool2d(pool_size, stride=1, pad=(ps-1)//2, count_include_pad=False) as an
    exact (HW,HW) operator built from its separable 1-D factors (kron)."""
    pad = (pool_size - 1) // 2

    def axis_factor(n):
        A = np.zeros((n, n), np.float32)
        for i in range(n):
            lo, hi = max(i - pad, 0), min(i - pad + pool_size, n)
            A[i, lo:hi] = 1.0 / (hi - lo)
        return A

    return np.kron(axis_factor(H), axis_factor(W)).astype(np.float32)


def pixel_shuffle_nhwc(x, r):
    B, H, W, C = x.shape
    co = C // (r * r)
    x = x.reshape(B, H, W, co, r, r)
    x = x.transpose(0, 1, 4, 2, 5, 3)            # B, H, ry, W, rx, co
    return x.reshape(B, H * r, W * r, co)


def bilinear_resize_dense(x, hout, wout, align_corners, out_dtype=_CDT):
    """Bilinear resize via a dense separable-kron operator (used for the small 2x
    feature upsample only; the mask downsample uses the separable kernel)."""
    B, H, W, C = x.shape
    P = np.kron(bilinear_matrix(hout, H, align_corners),
                bilinear_matrix(wout, W, align_corners))
    out = apply_operator_batched(jnp.asarray(P, dtype=_CDT),
                                 x.reshape(B, H * W, C), out_dtype=out_dtype)
    return out.reshape(B, hout, wout, C)


# ---------------------------------------------------------------------------
# Module forward passes
# ---------------------------------------------------------------------------
def glf_forward(p, high, low, emb_vec):
    """global_local_fusion.forward (kernel_size=3, upscale_factor=2)."""
    hs = pixel_shuffle_nhwc(high, 2)
    cat_in = jnp.concatenate([hs, low.astype(_CDT)], axis=-1)
    B, H, W, Cin = cat_in.shape
    inter = p["reduce_w"].shape[1]
    groups = p["groups"]

    # cat = self.reduce(cat)                      (1x1 conv)
    cat = matmul_affine_act(cat_in.reshape(B * H * W, Cin),
                            p["reduce_w"], p["reduce_b"]).reshape(B, H, W, inter)

    # s = LeakyReLU(conv1(cat) + embconv(emb))    (per-batch channel shift fused)
    oc = p["conv1_w"].shape[1]
    e = matmul_affine_act(emb_vec, p["emb_w"], p["emb_b"], out_dtype=jnp.float32)
    s = matmul_rowshift(cat.reshape(B, H * W, inter),
                        p["conv1_w"], p["conv1_b"], e,
                        neg_slope=NEG_SLOPE).reshape(B, H, W, oc)

    # weight map = conv2(s)  (channel order already permuted to t*groups+g at init)
    wmap = conv3x3(s, p["conv2_w"], p["conv2_b"])                    # (B,H,W,9*groups)

    # per-pixel grouped 3x3 MAC over cat (group g covers channels g*16 .. g*16+15)
    inv = involution3x3(cat, wmap, p["E"], groups)

    # self.out: 1x1 conv + BN + LeakyReLU
    out_c = p["out_w"].shape[1]
    out = matmul_affine_act(inv.reshape(B * H * W, inter),
                            p["out_w"], p["out_b"],
                            scale=p["out_bn_s"], shift=p["out_bn_sh"],
                            neg_slope=NEG_SLOPE)
    return out.reshape(B, H, W, out_c)


def tmf_decoder_forward(params, conv_out):
    conv0, conv1, conv2, _, _, conv5 = conv_out
    B, H5, W5, C5 = conv5.shape

    # mask = conv0[:, -2:].sum(1, keepdim); bilinear downsample (align_corners=False)
    mask0 = jnp.sum(conv0[..., -2:], axis=-1, keepdims=True)
    mask = bilinear_resize_1ch(mask0, H5, W5, align_corners=False)     # (B,H5,W5,1) f32

    # bf16 activation flow end-to-end (f32 only inside accumulators / epilogues)
    conv0 = conv0.astype(_CDT)
    conv1 = conv1.astype(_CDT)
    conv2 = conv2.astype(_CDT)
    conv5 = conv5.astype(_CDT)

    # PPM branch: [conv5] + 4 tripool scales, all 4 scales in ONE fused pallas_call
    pp = params["ppm"]
    ppm = ppm_tripool(conv5, mask, pp["P"], pp["w"], pp["b"], pp["bn_s"], pp["bn_sh"])
    x = jnp.concatenate([conv5, ppm], axis=-1)                         # (B,H5,W5,3072)

    # conv_up1: (3x3 conv + BN + LeakyReLU) x 2
    c1 = params["conv_up1"]
    x = conv3x3(x, c1["wA"], c1["bA"], c1["sA"], c1["shA"], neg_slope=NEG_SLOPE)
    x = conv3x3(x, c1["wB"], c1["bB"], c1["sB"], c1["shB"], neg_slope=NEG_SLOPE)

    # emb = AdaptiveAvgPool2d(1)(x)
    emb_vec = global_avg_pool(x)                                       # (B, 256) f32

    # x = interpolate(x, scale_factor=2, bilinear, align_corners=True)
    x = bilinear_resize_dense(x, 2 * H5, 2 * W5, align_corners=True)

    x = glf_forward(params["up2"], x, conv2, emb_vec)                  # (B,4H5,4W5,256)
    x = glf_forward(params["up3"], x, conv1, emb_vec)                  # (B,8H5,8W5,64)
    x = glf_forward(params["up4"], x, conv0, emb_vec)                  # (B,16H5,16W5,32)

    # conv_up4_2: 3x3 conv + LeakyReLU with the final 1x1 conv fused as a VPU epilogue
    c42 = params["conv_up4_2"]
    x = conv3x3(x, c42["w1"], c42["b1"], neg_slope=NEG_SLOPE,
                post_w=c42["w2"], post_b=c42["b2"], out_dtype=jnp.float32)
    return x


# ---------------------------------------------------------------------------
# Deterministic parameter initialisation (synthetic; no checkpoint)
# ---------------------------------------------------------------------------
class _ParamGen:
    def __init__(self, seed=42):
        self._key = jax.random.PRNGKey(seed)
        self._n = 0

    def _k(self):
        self._n += 1
        return jax.random.fold_in(self._key, self._n)

    def conv1x1(self, cin, cout, w_dtype=_CDT):
        w = (jax.random.normal(self._k(), (cin, cout), jnp.float32)
             / np.sqrt(cin)).astype(w_dtype)
        b = jax.random.normal(self._k(), (cout,), jnp.float32) * 0.01
        return w, b

    def conv3x3(self, cin, cout):
        w = (jax.random.normal(self._k(), (9, cin, cout), jnp.float32)
             / np.sqrt(9 * cin)).astype(_CDT)
        b = jax.random.normal(self._k(), (cout,), jnp.float32) * 0.01
        return w, b

    @staticmethod
    def bn(c):
        # eval-mode BatchNorm with freshly initialised params/buffers:
        # gamma=1, beta=0, running_mean=0, running_var=1, eps=1e-5  -> affine fold.
        # TODO(synk): training-mode (batch-statistics) BatchNorm is not implemented.
        return (jnp.full((c,), 1.0 / np.sqrt(1.0 + 1e-5), jnp.float32),
                jnp.zeros((c,), jnp.float32))


def init_glf_params(pg, channels, inter, out_channels):
    groups = inter // 16
    rw, rb = pg.conv1x1(channels, inter)
    oc = inter // 4
    c1w, c1b = pg.conv1x1(inter, oc)
    ew, eb = pg.conv1x1(256, oc)
    c2w, c2b = pg.conv3x3(oc, 9 * groups)
    # permute conv2 output channels once at init from the PyTorch order (g*9+t)
    # to (t*groups+g) so the involution kernel slices a contiguous group per tap.
    c2w = c2w.reshape(9, oc, groups, 9)
    c2w = jnp.transpose(c2w, (0, 1, 3, 2)).reshape(9, oc, 9 * groups)
    c2b = jnp.transpose(c2b.reshape(groups, 9), (1, 0)).reshape(9 * groups)
    ow, ob = pg.conv1x1(inter, out_channels)
    s, sh = pg.bn(out_channels)
    E = jnp.asarray(np.kron(np.eye(groups, dtype=np.float32),
                            np.ones((1, 16), np.float32)), dtype=_CDT)
    return dict(reduce_w=rw, reduce_b=rb, conv1_w=c1w, conv1_b=c1b,
                emb_w=ew, emb_b=eb, conv2_w=c2w, conv2_b=c2b,
                out_w=ow, out_b=ob, out_bn_s=s, out_bn_sh=sh,
                E=E, groups=groups)


def init_params(h5, w5, seed=42):
    pg = _ParamGen(seed)
    pw, pb, ps_, psh, Pm = [], [], [], [], []
    for psz in (31, 17, 11, 5):
        w, b = pg.conv1x1(2048, 256)
        s, sh = pg.bn(256)
        pw.append(w); pb.append(b); ps_.append(s); psh.append(sh)
        Pm.append(avgpool_matrix(h5, w5, psz))
    ppm = dict(w=jnp.stack(pw), b=jnp.stack(pb), bn_s=jnp.stack(ps_),
               bn_sh=jnp.stack(psh), P=jnp.asarray(np.stack(Pm), dtype=_CDT))
    wA, bA = pg.conv3x3(2048 + 4 * 256, 256)
    sA, shA = pg.bn(256)
    wB, bB = pg.conv3x3(256, 256)
    sB, shB = pg.bn(256)
    conv_up1 = dict(wA=wA, bA=bA, sA=sA, shA=shA, wB=wB, bB=bB, sB=sB, shB=shB)
    up2 = init_glf_params(pg, 64 + 256, 256, 256)
    up3 = init_glf_params(pg, 64 + 128, 256, 64)
    up4 = init_glf_params(pg, 16 + 3 + 3, 32, 32)
    w1, b1 = pg.conv3x3(32, 16)
    w2, b2 = pg.conv1x1(16, 1, w_dtype=jnp.float32)
    return dict(ppm=ppm, conv_up1=conv_up1, up2=up2, up3=up3, up4=up4,
                conv_up4_2=dict(w1=w1, b1=b1, w2=w2, b2=b2))


# ---------------------------------------------------------------------------
if __name__ == "__main__":
    B = 1
    H5 = W5 = 4          # conv5 spatial; conv0/1/2 are 16x / 8x / 4x larger

    key = jax.random.PRNGKey(0)
    k0a, k0b, k1, k2, k5 = jax.random.split(key, 5)
    # conv0: 6 channels; the last 2 (used to build the mask) are in [0,1) so the
    # tripool denominator behaves like a real soft mask.
    conv0 = jnp.concatenate(
        [jax.random.normal(k0a, (B, 16 * H5, 16 * W5, 4), jnp.float32),
         jax.random.uniform(k0b, (B, 16 * H5, 16 * W5, 2), jnp.float32)], axis=-1)
    conv1 = jax.random.normal(k1, (B, 8 * H5, 8 * W5, 128), jnp.float32)
    conv2 = jax.random.normal(k2, (B, 4 * H5, 4 * W5, 256), jnp.float32)
    conv3 = jnp.zeros((B, 2 * H5, 2 * W5, 1), jnp.float32)   # unused by forward
    conv4 = jnp.zeros((B, H5, W5, 1), jnp.float32)           # unused by forward
    conv5 = jax.random.normal(k5, (B, H5, W5, 2048), jnp.float32)

    params = init_params(H5, W5)
    out = tmf_decoder_forward(params, (conv0, conv1, conv2, conv3, conv4, conv5))
    out = jax.block_until_ready(out)

    assert out.shape == (B, 16 * H5, 16 * W5, 1), out.shape
    assert bool(jnp.all(jnp.isfinite(out)))
    print("KERNEL_OK")
</pallas_src>

<mosaic_0001>
module attributes {stable_mosaic.version = 11 : i64} {
  func.func @_resize2d_kernel(%arg0: i32, %arg1: memref<4x64xf32, #tpu.memory_space<vmem>>, %arg2: memref<64x4xf32, #tpu.memory_space<vmem>>, %arg3: memref<1x64x64xf32, #tpu.memory_space<vmem>>, %arg4: memref<1x4x4xf32, #tpu.memory_space<vmem>>) attributes {dimension_semantics = [#tpu.dimension_semantics<parallel>], iteration_bounds = array<i64: 1>, scalar_prefetch = 0 : i64, scratch_operands = 0 : i64, tpu.core_type = #tpu.core_type<tc>, window_params = [{pipeline_mode = #tpu.pipeline_mode<synchronous>, transform_indices = @transform_0, window_bounds = array<i64: 4, 64>}, {pipeline_mode = #tpu.pipeline_mode<synchronous>, transform_indices = @transform_1, window_bounds = array<i64: 64, 4>}, {transform_indices = @transform_2, window_bounds = array<i64: 1, 64, 64>}, {transform_indices = @transform_3, window_bounds = array<i64: 1, 4, 4>}]} {
    %c0 = arith.constant 0 : index
    %c0_0 = arith.constant 0 : index
    %c0_1 = arith.constant 0 : index
    %0 = vector.load %arg3[%c0, %c0_0, %c0_1] : memref<1x64x64xf32, #tpu.memory_space<vmem>>, vector<1x64x64xf32>
    %1 = vector.shape_cast %0 : vector<1x64x64xf32> to vector<64x64xf32>
    %c0_2 = arith.constant 0 : index
    %c0_3 = arith.constant 0 : index
    %2 = vector.load %arg2[%c0_2, %c0_3] : memref<64x4xf32, #tpu.memory_space<vmem>>, vector<64x4xf32>
    %cst = arith.constant dense<0.000000e+00> : vector<64x4xf32>
    %3 = tpu.matmul %1, %2, %cst {dimension_numbers = #tpu.dot_dimension_numbers<[1], [0], [0], [1], [0, 0, 1, 1], [], []>} : vector<64x64xf32>, vector<64x4xf32>, vector<64x4xf32> -> vector<64x4xf32>
    %c0_4 = arith.constant 0 : index
    %c0_5 = arith.constant 0 : index
    %4 = vector.load %arg1[%c0_4, %c0_5] : memref<4x64xf32, #tpu.memory_space<vmem>>, vector<4x64xf32>
    %cst_6 = arith.constant dense<0.000000e+00> : vector<4x4xf32>
    %5 = tpu.matmul %4, %3, %cst_6 {dimension_numbers = #tpu.dot_dimension_numbers<[1], [0], [0], [1], [0, 0, 1, 1], [], []>} : vector<4x64xf32>, vector<64x4xf32>, vector<4x4xf32> -> vector<4x4xf32>
    %c0_7 = arith.constant 0 : index
    %c0_8 = arith.constant 0 : index
    %c0_9 = arith.constant 0 : index
    %6 = vector.load %arg4[%c0_7, %c0_8, %c0_9] : memref<1x4x4xf32, #tpu.memory_space<vmem>>, vector<1x4x4xf32>
    %7 = vector.shape_cast %6 : vector<1x4x4xf32> to vector<4x4xf32>
    %8 = vector.shape_cast %5 : vector<4x4xf32> to vector<1x4x4xf32>
    tpu.vector_store %arg4[%c0_7, %c0_8, %c0_9], %8 {strides = array<i32>} : memref<1x4x4xf32, #tpu.memory_space<vmem>>, vector<1x4x4xf32>,
    return
  }
  func.func @transform_0(%arg0: i32) -> (i32, i32) {
    %c0_i32 = arith.constant 0 : i32
    %c0_i32_0 = arith.constant 0 : i32
    %c0_i32_1 = arith.constant 0 : i32
    return %c0_i32, %c0_i32_0 : i32, i32
  }
  func.func @transform_1(%arg0: i32) -> (i32, i32) {
    %c0_i32 = arith.constant 0 : i32
    %c0_i32_0 = arith.constant 0 : i32
    %c0_i32_1 = arith.constant 0 : i32
    return %c0_i32, %c0_i32_0 : i32, i32
  }
  func.func @transform_2(%arg0: i32) -> (i32, i32, i32) {
    %c0_i32 = arith.constant 0 : i32
    %c0_i32_0 = arith.constant 0 : i32
    %c0_i32_1 = arith.constant 0 : i32
    return %arg0, %c0_i32, %c0_i32_0 : i32, i32, i32
  }
  func.func @transform_3(%arg0: i32) -> (i32, i32, i32) {
    %c0_i32 = arith.constant 0 : i32
    %c0_i32_0 = arith.constant 0 : i32
    %c0_i32_1 = arith.constant 0 : i32
    return %arg0, %c0_i32, %c0_i32_0 : i32, i32, i32
  }
}

</mosaic_0001>

<bundles_post_ra>
// kernel: tpu_custom_call.1
= control target key start
LH: loop header
LB: loop body
LE: loop exit
PB: predicated region body
PF: predicated region fallthrough
CT: control target
= control target key end

     0   :  { %s275_s0 = inlined_call_operand.vmem [shape: f32[4,64], index: 0, kind: input, shape index: {}]   ;;  %s276_s1 = inlined_call_operand.vmem [shape: f32[64,4], index: 1, kind: input, shape index: {}]   ;;  %s277_s2 = inlined_call_operand.vmem [shape: f32[1,64,64], index: 2, kind: input, shape index: {}]   ;;  %s278_s3 = inlined_call_operand.hbm [shape: f32[1,4,4], index: 3, kind: output, shape index: {}]  }
   0x1   :  { %v30_v0 = vld [vmem:[%s276_s1 + $0x38] sm:$0xff]  ;;  %v29_v1 = vld [vmem:[%s276_s1 + $0x30] sm:$0xff]  ;;  %v28_v2 = vld [vmem:[%s276_s1 + $0x28] sm:$0xff] }
   0x2   :  { %149 = vmatpush.msra.mxu3 %v30_v0  ;;  %148 = vmatpush.msra.mxu2 %v30_v0  ;;  %v27_v3 = vld [vmem:[%s276_s1 + $0x20] sm:$0xff] }
   0x3   :  { %64 = vmatpush.msra.mxu0 %v30_v0 }
   0x4   :  { %151 = vmatpush.msra.mxu3 %v29_v1  ;;  %150 = vmatpush.msra.mxu2 %v29_v1 }
   0x5   :  { %65 = vmatpush.msra.mxu0 %v29_v1 }
   0x6   :  { %153 = vmatpush.msra.mxu3 %v28_v2  ;;  %152 = vmatpush.msra.mxu2 %v28_v2 }
   0x7   :  { %8 = vsyncpa [#allocation3], 0  ;;  %v26_v4 = vld [vmem:[%s276_s1 + $0x18] sm:$0xff]  ;;  %66 = vmatpush.msra.mxu0 %v28_v2  ;;  %v25_v5 = vld [vmem:[%s276_s1 + $0x10] sm:$0xff]  ;;  %vm31_vm0 = vcmask 523264   ;;  %s191_s17 = smov [#allocation2]  }
   0x8   :  { %155 = vmatpush.msra.mxu3 %v27_v3  ;;  %154 = vmatpush.msra.mxu2 %v27_v3  ;;  %v24_v6 = vld [vmem:[%s276_s1 + $0x8] sm:$0xff]  ;;  %v23_v7 = vld [vmem:[%s276_s1] sm:$0xff]  ;;  %v17_v9 = vld [vmem:[%s277_s2 + $0x10] sm:$0xff]  ;;  %s128_s18 = sshll.u32 %s191_s17, 4  ;;  %s130_s21 = sshll.u32 %s278_s3, 4  ;;  %vm121_vm1 = vcmask 27648   ;;  %s129_s18 = int_to_ptr.vmem [resolvable:$true] %s128_s18  ;;  %s131_s21 = int_to_ptr.hbm [resolvable:$true] %s130_s21 }
   0x9   :  { %67 = vmatpush.msra.mxu0 %v27_v3  ;;  %v20_v8 = vld [vmem:[%s277_s2 + $0x28] sm:$0xff]  ;;  %v15_v10 = vld [vmem:[%s277_s2] sm:$0xff]  ;;  %v21_v11 = vld [vmem:[%s277_s2 + $0x30] sm:$0xff] }
   0xa   :  { %157 = vmatpush.msra.mxu3 %v26_v4  ;;  %156 = vmatpush.msra.mxu2 %v26_v4  ;;  %v18_v12 = vld [vmem:[%s277_s2 + $0x18] sm:$0xff]  ;;  %v16_v13 = vld [vmem:[%s277_s2 + $0x8] sm:$0xff]  ;;  %v19_v15 = vld [vmem:[%s277_s2 + $0x20] sm:$0xff] }
   0xb   :  { %68 = vmatpush.msra.mxu0 %v26_v4  ;;  %v22_v14 = vld [vmem:[%s277_s2 + $0x38] sm:$0xff]  ;;  %v97_v24 = vld [vmem:[%s275_s0] sm:$0xf] }
   0xc   :  { %159 = vmatpush.msra.mxu3 %v25_v5  ;;  %158 = vmatpush.msra.mxu2 %v25_v5 }
   0xd   :  { %69 = vmatpush.msra.mxu0 %v25_v5 }
   0xe   :  { %161 = vmatpush.msra.mxu3 %v24_v6  ;;  %160 = vmatpush.msra.mxu2 %v24_v6 }
   0xf   :  { %70 = vmatpush.msra.mxu0 %v24_v6 }
  0x10   :  { %163 = vmatpush.msra.mxu3 %v23_v7  ;;  %162 = vmatpush.msra.mxu2 %v23_v7 }
  0x11   :  { %144 = vmatmul.msk.f32.vlgmr.msra.gmra.mxu3 %vm31_vm0, %v20_v8  ;;  %141 = vmatmul.msk.f32.vlgmr.msra.gmra.mxu2 %vm31_vm0, %v17_v9 }
  0x12   :  { %71 = vmatpush.msra.mxu0 %v23_v7 }
  0x13   :  { %139 = vmatmul.msk.f32.vlgmr.msra.gmra.mxu0 %vm31_vm0, %v15_v10 }
  0x19   :  { %145 = vmatmul.msk.f32.gmra.mxu3 %vm31_vm0, %v21_v11  ;;  %142 = vmatmul.msk.f32.gmra.mxu2 %vm31_vm0, %v18_v12 }
  0x1b   :  { %140 = vmatmul.msk.f32.gmra.mxu0 %vm31_vm0, %v16_v13 }
  0x21   :  { %146 = vmatmul.msk.f32.gmra.mxu3 %vm31_vm0, %v22_v14  ;;  %143 = vmatmul.msk.f32.gmra.mxu2 %vm31_vm0, %v19_v15 }
  0x90   :  { %v73_v21 = vpop.f32.mrf.mxu0 }
  0x94   :  { %v88_v16 = vpop.f32.mrf.mxu3  ;;  %v79_v17 = vpop.f32.mrf.mxu2 }
  0x98   :  { %v76_v23 = vpop.f32.mrf.mxu0 }
  0x9c   :  { %v91_v18 = vpop.f32.mrf.mxu3  ;;  %v82_v19 = vpop.f32.mrf.mxu2 }
  0xa4   :  { %v94_v20 = vpop.f32.mrf.mxu3  ;;  %v85_v22 = vpop.f32.mrf.mxu2 }
  0xa5   :  { %109 = vmatpush.msra.mxu1 %v94_v20 }
  0xa7   :  { %110 = vmatpush.msra.mxu1 %v91_v18 }
  0xa9   :  { %111 = vmatpush.msra.mxu1 %v88_v16 }
  0xab   :  { %112 = vmatpush.msra.mxu1 %v85_v22 }
  0xad   :  { %113 = vmatpush.msra.mxu1 %v82_v19 }
  0xaf   :  { %114 = vmatpush.msra.mxu1 %v79_v17 }
  0xb1   :  { %115 = vmatpush.msra.mxu1 %v76_v23 }
  0xb3   :  { %116 = vmatpush.msra.mxu1 %v73_v21 }
  0xb4   :  { %147 = vmatmul.msk.f32.vlgmr.msra.gmra.mxu1 %vm31_vm0, %v97_v24 }
 0x131   :  { %v118_v25 = vpop.f32.mrf.mxu1 }
 0x132   :  { %122 = vst.msk [vmem:[#allocation2] sm:$0xf] %vm121_vm1, %v118_v25 }
 0x133   :  { %133 = dma.vmem_to_hbm [thread:$0]  %s129_s18, 64, %s131_s21, [#allocation3]  }
 0x134   :  { %189 = dma.done.wait [#allocation3], 64  }
 0x135   :  { %190 = vsyncadd [#allocation3], 4294967232 }
 0x136   :  { %138 = vsyncpa [#allocation3], 1 }

</bundles_post_ra>
